<compile_context>
chip_gen: v7x
topology: tpu7x:2x2x1
jax: 0.10.0
libtpu: 0.0.40
codegen_flags: <defaults>
</compile_context>

<pallas_src>
import functools

import jax
import jax.numpy as jnp
from jax.experimental import pallas as pl
from jax.experimental.pallas import tpu as pltpu

LANE = 128
SUB_ROWS = 512                         # rows reduced per inner iteration (256 KiB f32)
ACC_ROWS = 64                          # accumulator slab: 8 f32 vregs -> 8 add chains
DEFAULT_BLOCK_BYTES = 8 * 1024 * 1024  # per input buffer (x2 for double buffering)


def _cdiv(a, b):
    return -(-a // b)


def _round_up(a, b):
    return _cdiv(a, b) * b


def _num_tensorcores() -> int:
    """2 on TPU v7x (dual TensorCore per chip), else 1 (v5e / v6e / CPU)."""
    try:
        kind = jax.devices()[0].device_kind.lower().replace(" ", "")
    except Exception:
        return 1
    return 2 if ("v7" in kind or "tpu7" in kind) else 1


def _sumsq_kernel(x_ref, o_ref, acc_ref, *, tile_rows, total_rows, steps,
                  chunk_rows, acc_rows, needs_mask):
    """Accumulate sum(x^2) of one (tile_rows, 128) block into acc_ref."""
    c = pl.program_id(0)          # core-parallel part (1 or 2 on v7x)
    i = pl.program_id(1)          # reduction step within this part

    @pl.when(i == 0)
    def _init():
        acc_ref[...] = jnp.zeros_like(acc_ref)

    nsub = tile_rows // chunk_rows        # compile-time
    groups = chunk_rows // acc_rows       # compile-time
    # NOTE: int32 row indices -> fine up to ~2.7e11 elements.
    row0 = (c * steps + i) * tile_rows    # first logical row of this block

    def add_chunk(r0, masked):
        xs = x_ref[pl.ds(r0, chunk_rows), :].astype(jnp.float32)
        if masked:
            rid = (row0 + r0) + jax.lax.broadcasted_iota(
                jnp.int32, (chunk_rows, LANE), 0)
            xs = jnp.where(rid < total_rows, xs, 0.0)
        xsq = xs * xs
        if groups > 1:
            # (groups, acc_rows, 128) -> acc_rows independent vreg add chains.
            xsq = jnp.sum(xsq.reshape(groups, acc_rows, LANE), axis=0)
        acc_ref[...] += xsq

    def run_block(masked):
        if nsub == 1:
            add_chunk(0, masked)
        else:
            @pl.loop(0, nsub)
            def _(s):
                add_chunk(pl.multiple_of(s * chunk_rows, chunk_rows), masked)

    if needs_mask:
        # Only the ragged last block (or a clamped surplus block) pays for the
        # iota/compare/select; every full block takes the plain fast path.
        full = (row0 + tile_rows) <= total_rows

        @pl.when(full)
        def _fast():
            run_block(False)

        @pl.when(jnp.logical_not(full))
        def _masked():
            run_block(True)
    else:
        run_block(False)

    @pl.when(i == pl.num_programs(1) - 1)
    def _flush():
        o_ref[...] = acc_ref[...].reshape(1, acc_rows, LANE)


def disc_shift_loss_pallas(pred: jax.Array, loss_weight: float = 1.0,
                           *, block_bytes: int = DEFAULT_BLOCK_BYTES) -> jax.Array:
    """Compute mean(pred**2) * loss_weight with a Pallas TPU reduction kernel."""
    numel = int(pred.size)
    if numel == 0:
        return jnp.float32(0.0)

    # Stream native float dtypes; anything else falls back to f32.
    if pred.dtype.name not in ("float32", "bfloat16", "float16"):
        pred = pred.astype(jnp.float32)
    itemsize = jnp.dtype(pred.dtype).itemsize

    flat = pred.reshape(-1)
    rows = numel // LANE
    prefix = rows * LANE

    # <128-element tail handled with a tiny plain-JAX sum (no full-array pad copy).
    tail_sum = jnp.float32(0.0)
    if prefix < numel:
        tail = flat[prefix:]
        tail_sum = jnp.sum(jnp.square(tail.astype(jnp.float32)))

    kernel_sum = jnp.float32(0.0)
    if rows > 0:
        x2d = (flat if prefix == numel else flat[:prefix]).reshape(rows, LANE)

        # --- tiling ----------------------------------------------------------
        if rows < SUB_ROWS:
            tile_rows = rows                     # full-dim block (tiny inputs)
            num_blocks = 1
        else:
            target = max(SUB_ROWS,
                         (block_bytes // (LANE * itemsize)) // SUB_ROWS * SUB_ROWS)
            tile_rows = min(target, _round_up(rows, SUB_ROWS))
            num_blocks = _cdiv(rows, tile_rows)

        num_parts = 2 if (_num_tensorcores() >= 2 and num_blocks >= 2) else 1
        if num_parts == 2 and num_blocks % 2 != 0:
            # Make the 2-TensorCore split exact (no clamped surplus block /
            # wasted HBM read, balanced cores).
            t2 = max(SUB_ROWS, _round_up(_cdiv(rows, num_blocks + 1), SUB_ROWS))
            nb2 = _cdiv(rows, t2)
            if nb2 >= 2 and nb2 % 2 == 0:
                tile_rows, num_blocks = t2, nb2
        steps = _cdiv(num_blocks, num_parts)

        has_surplus = num_parts * steps != num_blocks   # rare fallback only
        has_ragged = (rows % tile_rows) != 0
        needs_mask = has_surplus or has_ragged

        chunk_rows = min(SUB_ROWS, tile_rows)           # tile_rows % chunk_rows == 0
        acc_rows = ACC_ROWS
        while acc_rows > 1 and chunk_rows % acc_rows != 0:
            acc_rows //= 2

        last_block = num_blocks - 1
        kernel = functools.partial(
            _sumsq_kernel,
            tile_rows=tile_rows, total_rows=rows, steps=steps,
            chunk_rows=chunk_rows, acc_rows=acc_rows, needs_mask=needs_mask)

        # Input is double-buffered in its native dtype; headroom covers the
        # bounded sub-chunk f32 temporaries (incl. bf16->f32 cast) + scratch.
        vmem_limit = 2 * tile_rows * LANE * itemsize + (8 << 20)
        vmem_limit = int(min(max(vmem_limit, 16 << 20), 64 << 20))

        partials = pl.pallas_call(
            kernel,
            out_shape=jax.ShapeDtypeStruct((num_parts, acc_rows, LANE), jnp.float32),
            grid_spec=pltpu.PrefetchScalarGridSpec(
                num_scalar_prefetch=0,
                grid=(num_parts, steps),
                in_specs=[pl.BlockSpec(
                    (tile_rows, LANE),
                    lambda c, i, s=steps, lb=last_block: (jnp.minimum(c * s + i, lb), 0))],
                out_specs=pl.BlockSpec((1, acc_rows, LANE), lambda c, i: (c, 0, 0)),
                scratch_shapes=[pltpu.VMEM((acc_rows, LANE), jnp.float32)],
            ),
            # TODO(synk): on v7x, confirm with a profile that the leading size-2
            # axis shards across both TensorCores; switch to CORE_PARALLEL if not.
            compiler_params=pltpu.CompilerParams(
                dimension_semantics=("parallel", "arbitrary"),
                vmem_limit_bytes=vmem_limit,
            ),
        )(x2d)
        kernel_sum = jnp.sum(partials)

    # Fused mean + loss_weight scaling (scalar work outside the kernel).
    scale = float(loss_weight) / float(numel)
    return (kernel_sum + tail_sum) * jnp.float32(scale)


class DiscShiftLossCompsPallas:
    """JAX/Pallas port of mmagic DiscShiftLossComps (forward only)."""

    def __init__(self, loss_weight: float = 1.0, data_info=None,
                 loss_name: str = "loss_disc_shift"):
        self.loss_weight = loss_weight
        self.data_info = data_info
        self._loss_name = loss_name

    def __call__(self, *args, **kwargs):
        if self.data_info is not None:
            if len(args) == 1:
                assert isinstance(args[0], dict), (
                    "You should offer a dictionary containing network outputs "
                    "for building up computational graph of this loss module.")
                outputs_dict = args[0]
            elif "outputs_dict" in kwargs:
                assert len(args) == 0, (
                    "If the outputs dict is given in keyworded arguments, no "
                    "further non-keyworded arguments should be offered.")
                outputs_dict = kwargs.pop("outputs_dict")
            else:
                raise NotImplementedError(
                    "Cannot parsing your arguments passed to this loss module.")
            loss_input_dict = {k: outputs_dict[v]
                               for k, v in self.data_info.items()}
            kwargs.update(loss_input_dict)
            return disc_shift_loss_pallas(kwargs["pred"], self.loss_weight)
        else:
            pred = args[0] if args else kwargs["pred"]
            return disc_shift_loss_pallas(pred, self.loss_weight)

    def loss_name(self) -> str:
        return self._loss_name


if __name__ == "__main__":
    key = jax.random.PRNGKey(0)
    k0, k1, k2 = jax.random.split(key, 3)

    # 1) Small NCHW discriminator prediction routed through data_info.
    pred = jax.random.normal(k0, (2, 4, 16, 16), dtype=jnp.float32)
    loss_mod = DiscShiftLossCompsPallas(
        loss_weight=0.5, data_info=dict(pred="disc_pred_fake"))
    loss = jax.block_until_ready(loss_mod(dict(disc_pred_fake=pred)))
    ref = jnp.mean(pred ** 2) * 0.5
    assert jnp.allclose(loss, ref, rtol=1e-5, atol=1e-7), (loss, ref)

    # 2) Multi-block path + ragged (masked) last block + misaligned <128 tail,
    #    exercising the in-kernel sub-chunk loop (small block_bytes forces it).
    pred2 = jax.random.normal(k1, (2, 1, 338, 209), dtype=jnp.float32)
    loss2 = jax.block_until_ready(
        disc_shift_loss_pallas(pred2, loss_weight=1.3,
                               block_bytes=2 * SUB_ROWS * LANE * 4))
    ref2 = jnp.mean(pred2 ** 2) * 1.3
    assert jnp.allclose(loss2, ref2, rtol=1e-5, atol=1e-7), (loss2, ref2)

    # 3) Native bf16 streaming (cast to f32 happens in-kernel).
    pred3 = jax.random.normal(k2, (2, 4, 16, 16), dtype=jnp.bfloat16)
    loss3 = jax.block_until_ready(disc_shift_loss_pallas(pred3, loss_weight=2.0))
    ref3 = jnp.mean(jnp.square(pred3.astype(jnp.float32))) * 2.0
    assert jnp.allclose(loss3, ref3, rtol=1e-5, atol=1e-6), (loss3, ref3)

    print("KERNEL_OK")
</pallas_src>

<mosaic_0001>
module attributes {stable_mosaic.version = 11 : i64} {
  func.func @_sumsq_kernel(%arg0: i32, %arg1: i32, %arg2: memref<16x128xf32, #tpu.memory_space<vmem>>, %arg3: memref<1x16x128xf32, #tpu.memory_space<vmem>>, %arg4: memref<16x128xf32, #tpu.memory_space<vmem>>) attributes {dimension_semantics = [#tpu.dimension_semantics<parallel>, #tpu.dimension_semantics<arbitrary>], iteration_bounds = array<i64: 1, 1>, scalar_prefetch = 0 : i64, scratch_operands = 1 : i64, tpu.core_type = #tpu.core_type<tc>, window_params = [{transform_indices = @transform_0, window_bounds = array<i64: 16, 128>}, {transform_indices = @transform_1, window_bounds = array<i64: 1, 16, 128>}]} {
    %c0_i32 = arith.constant 0 : i32
    %0 = arith.cmpi eq, %arg1, %c0_i32 : i32
    %1 = arith.extui %0 : i1 to i32
    %c0_i32_0 = arith.constant 0 : i32
    %2 = arith.cmpi ne, %1, %c0_i32_0 : i32
    scf.if %2 {
      %cst = arith.constant 0.000000e+00 : f32
      %11 = vector.broadcast %cst : f32 to vector<16x128xf32>
      %c0_8 = arith.constant 0 : index
      %c0_9 = arith.constant 0 : index
      %12 = vector.load %arg4[%c0_8, %c0_9] : memref<16x128xf32, #tpu.memory_space<vmem>>, vector<16x128xf32>
      tpu.vector_store %arg4[%c0_8, %c0_9], %11 {strides = array<i32>} : memref<16x128xf32, #tpu.memory_space<vmem>>, vector<16x128xf32>,
    } else {
    }
    %c0 = arith.constant 0 : index
    %c0_1 = arith.constant 0 : index
    %3 = vector.load %arg2[%c0, %c0_1] : memref<16x128xf32, #tpu.memory_space<vmem>>, vector<16x128xf32>
    %4 = arith.mulf %3, %3 : vector<16x128xf32>
    %c0_2 = arith.constant 0 : index
    %c0_3 = arith.constant 0 : index
    %5 = vector.load %arg4[%c0_2, %c0_3] : memref<16x128xf32, #tpu.memory_space<vmem>>, vector<16x128xf32>
    %6 = arith.addf %5, %4 : vector<16x128xf32>
    %c0_4 = arith.constant 0 : index
    %c0_5 = arith.constant 0 : index
    %7 = vector.load %arg4[%c0_4, %c0_5] : memref<16x128xf32, #tpu.memory_space<vmem>>, vector<16x128xf32>
    tpu.vector_store %arg4[%c0_4, %c0_5], %6 {strides = array<i32>} : memref<16x128xf32, #tpu.memory_space<vmem>>, vector<16x128xf32>,
    %c0_i32_6 = arith.constant 0 : i32
    %8 = arith.cmpi eq, %arg1, %c0_i32_6 : i32
    %9 = arith.extui %8 : i1 to i32
    %c0_i32_7 = arith.constant 0 : i32
    %10 = arith.cmpi ne, %9, %c0_i32_7 : i32
    scf.if %10 {
      %c0_8 = arith.constant 0 : index
      %c0_9 = arith.constant 0 : index
      %11 = vector.load %arg4[%c0_8, %c0_9] : memref<16x128xf32, #tpu.memory_space<vmem>>, vector<16x128xf32>
      %12 = vector.shape_cast %11 : vector<16x128xf32> to vector<1x16x128xf32>
      %c0_10 = arith.constant 0 : index
      %c0_11 = arith.constant 0 : index
      %c0_12 = arith.constant 0 : index
      %13 = vector.load %arg3[%c0_10, %c0_11, %c0_12] : memref<1x16x128xf32, #tpu.memory_space<vmem>>, vector<1x16x128xf32>
      tpu.vector_store %arg3[%c0_10, %c0_11, %c0_12], %12 {strides = array<i32>} : memref<1x16x128xf32, #tpu.memory_space<vmem>>, vector<1x16x128xf32>,
    } else {
    }
    return
  }
  func.func @transform_0(%arg0: i32, %arg1: i32) -> (i32, i32) {
    %c1_i32 = arith.constant 1 : i32
    %0 = arith.muli %arg0, %c1_i32 : i32
    %1 = arith.addi %0, %arg1 : i32
    %c0_i32 = arith.constant 0 : i32
    %2 = arith.minsi %1, %c0_i32 : i32
    %c0_i32_0 = arith.constant 0 : i32
    %c0_i32_1 = arith.constant 0 : i32
    return %2, %c0_i32_0 : i32, i32
  }
  func.func @transform_1(%arg0: i32, %arg1: i32) -> (i32, i32, i32) {
    %c0_i32 = arith.constant 0 : i32
    %c0_i32_0 = arith.constant 0 : i32
    %c0_i32_1 = arith.constant 0 : i32
    return %arg0, %c0_i32, %c0_i32_0 : i32, i32, i32
  }
}

</mosaic_0001>

<bundles_post_ra>
// kernel: tpu_custom_call.1
= control target key start
LH: loop header
LB: loop body
LE: loop exit
PB: predicated region body
PF: predicated region fallthrough
CT: control target
= control target key end

     0   :  { %6 = vsyncpa [#allocation4], 0  ;;  %s165_s0 = inlined_call_operand.hbm [shape: f32[16,128], index: 0, kind: input, shape index: {}]   ;;  %s166_s1 = inlined_call_operand.hbm [shape: f32[1,16,128], index: 1, kind: output, shape index: {}]  }
   0x1   :  { %7 = vsyncpa [#allocation5], 0  ;;  %s127_s6 = smov [#allocation3]   ;;  %s79_s10 = scalar_lea.hbm %s165_s0, 256 }
   0x2   :  { %s19_s7 = sshll.u32 %s127_s6, 4  ;;  %p80_p0 = scmp.ne.s32.totalorder %s165_s0, %s79_s10  ;;  %s20_s7 = int_to_ptr.vmem [resolvable:$true] %s19_s7 }
   0x3   :  { %p83_p1 = scmp.lt.u32.totalorder %s79_s10, %s165_s0 }
   0x5   :  { %p85_p2 = pnand %p83_p1, %p80_p0 }
   0x7   :  { %88 = shalt.err (!%p85_p2)
}
   0x8   :  { %s89_s15 = scalar_lea.vmem %s20_s7, 256  ;;  %p94_p4 = scmp.lt.s32.totalorder %s20_s7, %s20_s7 }
   0x9   :  { %p90_p3 = scmp.ne.s32.totalorder %s20_s7, %s89_s15  ;;  %p95_p5 = scmp.lt.s32.totalorder %s89_s15, %s89_s15 }
   0xb   :  { %p96_p6 = por %p95_p5, %p94_p4 }
   0xd   :  { %p97_p7 = pnand %p96_p6, %p90_p3 }
   0xf   :  { %100 = shalt.err (!%p97_p7)
}
  0x10   :  { %s128_s16 = smov 128   ;;  %s129_s17 = smov 8  }
  0x11   :  { %25 = dma.hbm_to_vmem [thread:$0]  %s165_s0, 256, %s20_s7, [#allocation4], %s128_s16, %s128_s16, %s129_s17  }
  0x12   :  { %123 = dma.done.wait [#allocation4], 256  }
  0x13   :  { %124 = vsyncadd [#allocation4], 4294967040  ;;  %s130_s20 = smov [#allocation6]   ;;  %v39_v0 = vld [vmem:[#allocation3] sm:$0xff]  ;;  %v40_v1 = vld [vmem:[#allocation3 + $0x8] sm:$0xff] }
  0x14   :  { %s61_s21 = sshll.u32 %s130_s20, 4  ;;  %v41_v2 = vmul.f32 %v39_v0, %v39_v0  ;;  %v42_v3 = vmul.f32 %v40_v1, %v40_v1  ;;  %s62_s21 = int_to_ptr.vmem [resolvable:$true] %s61_s21 }
  0x15   :  { %s101_s22 = scalar_lea.vmem %s62_s21, 256  ;;  %p106_p9 = scmp.lt.s32.totalorder %s62_s21, %s62_s21 }
  0x16   :  { %54 = vst [vmem:[#allocation6] sm:$0xff] %v41_v2  ;;  %55 = vst [vmem:[#allocation6 + $0x8] sm:$0xff] %v42_v3  ;;  %p102_p8 = scmp.ne.s32.totalorder %s62_s21, %s101_s22  ;;  %p107_p10 = scmp.lt.s32.totalorder %s101_s22, %s101_s22 }
  0x18   :  { %p108_p11 = por %p107_p10, %p106_p9 }
  0x1a   :  { %p109_p12 = pnand %p108_p11, %p102_p8 }
  0x1c   :  { %112 = shalt.err (!%p109_p12)
}
  0x1d   :  { %s113_s24 = scalar_lea.hbm %s166_s1, 256 }
  0x1e   :  { %p114_p13 = scmp.ne.s32.totalorder %s166_s1, %s113_s24  ;;  %p117_p0 = scmp.lt.u32.totalorder %s113_s24, %s166_s1 }
  0x20   :  { %p119_p1 = pnand %p117_p0, %p114_p13 }
  0x22   :  { %122 = shalt.err (!%p119_p1)
}
  0x23   :  { %67 = dma.vmem_to_hbm [thread:$0]  %s62_s21, 256, %s166_s1, [#allocation5], %s128_s16, %s128_s16, %s129_s17  }
  0x24   :  { %125 = dma.done.wait [#allocation5], 256  }
  0x25   :  { %126 = vsyncadd [#allocation5], 4294967040 }
  0x26   :  { %71 = vsyncpa [#allocation4], 1 }
  0x27   :  { %72 = vsyncpa [#allocation5], 1 }

</bundles_post_ra>
